<compile_context>
chip_gen: v7x
topology: tpu7x:2x2x1
jax: 0.10.0
libtpu: 0.0.40
codegen_flags: <defaults>
</compile_context>

<pallas_src>
import math
from functools import partial

import jax
import jax.numpy as jnp
from jax.experimental import pallas as pl
from jax.experimental.pallas import tpu as pltpu


def mhsa_source_attention_kernel(x_ref, mem_ref, wq_ref, bq_ref, wk_ref, bk_ref,
                                 wv_ref, bv_ref, o_ref, *, head_num):
    _, tq, D = x_ref.shape        # (1, query tile, features)
    H = head_num
    dh = D // H
    scale = 1.0 / math.sqrt(dh)

    xb = x_ref[0]                 # (tq, D)  bf16
    mb = mem_ref[0]               # (Nk, D)  bf16

    # Full-width, lane-dense projections: one (tq,D)@(D,D) and two (Nk,D)@(D,D)
    # MXU matmuls with f32 accumulation; biases added once in f32.
    q = jnp.dot(xb, wq_ref[...], preferred_element_type=jnp.float32) + bq_ref[...]  # (tq, D)
    k = jnp.dot(mb, wk_ref[...], preferred_element_type=jnp.float32) + bk_ref[...]  # (Nk, D)
    v = jnp.dot(mb, wv_ref[...], preferred_element_type=jnp.float32) + bv_ref[...]  # (Nk, D)

    # bf16 MXU operands for the attention stage; fold the softmax scale into q.
    q16 = (q * scale).astype(jnp.bfloat16)     # (tq, D)
    kT16 = k.T.astype(jnp.bfloat16)            # (D, Nk)  one transpose per block
    v16 = v.astype(jnp.bfloat16)               # (Nk, D)

    # Heads split here as static slices of the activations (weights stay (D, D)).
    # H is small and static -> tight unrolled loop; per-head intermediates die
    # at the (tq, dh) head output.
    head_outs = []
    for h in range(H):
        qh = q16[:, h * dh:(h + 1) * dh]       # (tq, dh)
        kTh = kT16[h * dh:(h + 1) * dh, :]     # (dh, Nk)  N on lanes, no relayout
        vh = v16[:, h * dh:(h + 1) * dh]       # (Nk, dh)

        s = jnp.dot(qh, kTh, preferred_element_type=jnp.float32)   # (tq, Nk) f32
        s = s - jnp.max(s, axis=-1, keepdims=True)
        e = jnp.exp(s)
        denom = jnp.sum(e, axis=-1, keepdims=True)
        r = pl.reciprocal(denom, approx=True)                      # EUP slot
        r = r * (2.0 - denom * r)              # one Newton step -> near-exact
        p = e * r
        # (reference dropout p=0.0 -> identity, omitted)
        head_outs.append(
            jnp.dot(p.astype(jnp.bfloat16), vh, preferred_element_type=jnp.float32))

    # Concat heads in registers -> single lane-dense (tq, D) store.
    out = jnp.concatenate(head_outs, axis=-1)                      # (tq, D) f32
    o_ref[0] = out.astype(o_ref.dtype)


def multi_head_source_attention(x, memory, wq, bq, wkv, bkv, head_num,
                                block_q=None, vmem_limit_bytes=None):
    """x: (B, N, D); memory: (B, Nk, D); wq: (D, D); bq: (D,);
    wkv: (D, 2D); bkv: (2D,). Weights are stored as (D_in, D_out)."""
    B, N, D = x.shape
    Bm, Nk, Dm = memory.shape
    assert (Bm, Dm) == (B, D)
    assert D % head_num == 0, 'dim must be divisible by head_num'

    # Fused kv projection split into K / V halves on the host (K first, V second,
    # matching to_eachhead's torch.chunk along the output dim).
    wk, wv = wkv[:, :D], wkv[:, D:]
    bk, bv = bkv[:D], bkv[D:]

    # bf16 MXU operands; f32 biases (added post-matmul in f32 inside the kernel).
    x16 = x.astype(jnp.bfloat16)
    m16 = memory.astype(jnp.bfloat16)
    wq16 = wq.astype(jnp.bfloat16)
    wk16 = wk.astype(jnp.bfloat16)
    wv16 = wv.astype(jnp.bfloat16)
    bq2 = bq.reshape(1, D).astype(jnp.float32)
    bk2 = bk.reshape(1, D).astype(jnp.float32)
    bv2 = bv.reshape(1, D).astype(jnp.float32)

    # Query-block tiling: bounds the live (tq, Nk) score tile and, together with
    # the batch axis, gives a real multi-step "parallel" grid (v7x megacore).
    if block_q is None:
        block_q = N if N <= 256 else 128
    assert N % block_q == 0, 'N must be divisible by block_q'
    grid = (B, N // block_q)

    # NOTE: weight/bias blocks have constant index_maps; Pallas does not re-DMA
    # them across steps. At large D, single-buffer them (pipeline_mode) or
    # budget vmem_limit_bytes per generation (v7x: 64 MiB physical).
    # TODO(synk): for very long Nk, hoist the K/V projection out of the query
    # loop and add an online-softmax KV-block loop (flash pattern).
    cp_kwargs = dict(dimension_semantics=("parallel", "parallel"))
    if vmem_limit_bytes is not None:
        cp_kwargs["vmem_limit_bytes"] = vmem_limit_bytes

    kernel = partial(mhsa_source_attention_kernel, head_num=head_num)
    return pl.pallas_call(
        kernel,
        out_shape=jax.ShapeDtypeStruct((B, N, D), x.dtype),
        grid=grid,
        in_specs=[
            pl.BlockSpec((1, block_q, D), lambda b, qi: (b, qi, 0)),   # x (query tile)
            pl.BlockSpec((1, Nk, D), lambda b, qi: (b, 0, 0)),         # memory (full kv)
            pl.BlockSpec((D, D), lambda b, qi: (0, 0)),                # Wq
            pl.BlockSpec((1, D), lambda b, qi: (0, 0)),                # bq
            pl.BlockSpec((D, D), lambda b, qi: (0, 0)),                # Wk
            pl.BlockSpec((1, D), lambda b, qi: (0, 0)),                # bk
            pl.BlockSpec((D, D), lambda b, qi: (0, 0)),                # Wv
            pl.BlockSpec((1, D), lambda b, qi: (0, 0)),                # bv
        ],
        out_specs=pl.BlockSpec((1, block_q, D), lambda b, qi: (b, qi, 0)),
        compiler_params=pltpu.CompilerParams(**cp_kwargs),
    )(x16, m16, wq16, bq2, wk16, bk2, wv16, bv2)


def reference_forward(x, memory, wq, bq, wkv, bkv, head_num):
    """Pure-JAX mirror of the PyTorch module (f32) for verification."""
    B, N, D = x.shape
    q = x @ wq + bq
    kv = memory @ wkv + bkv
    k, v = kv[..., :D], kv[..., D:]
    d = D // head_num

    def split_heads(t):
        Bt, Nt, _ = t.shape
        return t.reshape(Bt, Nt, head_num, d).transpose(0, 2, 1, 3)   # (B, h, n, d')

    qh, kh, vh = split_heads(q), split_heads(k), split_heads(v)
    s = jnp.einsum('bhqd,bhkd->bhqk', qh, kh) / math.sqrt(d)
    a = jax.nn.softmax(s, axis=-1)
    o = jnp.einsum('bhqk,bhkd->bhqd', a, vh)
    return o.transpose(0, 2, 1, 3).reshape(B, N, D)


if __name__ == "__main__":
    B, N, D = 2, 8, 32
    head_num = 4

    key = jax.random.PRNGKey(0)
    kx, kmem, kwq, kbq, kwkv, kbkv = jax.random.split(key, 6)

    x = jax.random.normal(kx, (B, N, D), dtype=jnp.float32)
    memory = jax.random.normal(kmem, (B, N, D), dtype=jnp.float32)

    # nn.Linear-style uniform(-1/sqrt(D), 1/sqrt(D)) init; weights stored as (in, out).
    bound = 1.0 / math.sqrt(D)
    wq = jax.random.uniform(kwq, (D, D), jnp.float32, -bound, bound)
    bq = jax.random.uniform(kbq, (D,), jnp.float32, -bound, bound)
    wkv = jax.random.uniform(kwkv, (D, 2 * D), jnp.float32, -bound, bound)
    bkv = jax.random.uniform(kbkv, (2 * D,), jnp.float32, -bound, bound)

    out = multi_head_source_attention(x, memory, wq, bq, wkv, bkv, head_num)
    out = jax.block_until_ready(out)

    ref = reference_forward(x, memory, wq, bq, wkv, bkv, head_num)
    assert out.shape == (B, N, D)
    # Tolerance accounts for bf16 MXU operands (f32 accumulation / softmax).
    assert jnp.allclose(out, ref, atol=2e-2, rtol=2e-2), "mismatch vs reference"

    print("KERNEL_OK")
</pallas_src>

<mosaic_0001>
module attributes {stable_mosaic.version = 11 : i64} {
  func.func @mhsa_source_attention_kernel(%arg0: i32, %arg1: i32, %arg2: memref<1x8x32xbf16, #tpu.memory_space<vmem>>, %arg3: memref<1x8x32xbf16, #tpu.memory_space<vmem>>, %arg4: memref<32x32xbf16, #tpu.memory_space<vmem>>, %arg5: memref<1x32xf32, #tpu.memory_space<vmem>>, %arg6: memref<32x32xbf16, #tpu.memory_space<vmem>>, %arg7: memref<1x32xf32, #tpu.memory_space<vmem>>, %arg8: memref<32x32xbf16, #tpu.memory_space<vmem>>, %arg9: memref<1x32xf32, #tpu.memory_space<vmem>>, %arg10: memref<1x8x32xf32, #tpu.memory_space<vmem>>) attributes {dimension_semantics = [#tpu.dimension_semantics<parallel>, #tpu.dimension_semantics<parallel>], iteration_bounds = array<i64: 2, 1>, scalar_prefetch = 0 : i64, scratch_operands = 0 : i64, tpu.core_type = #tpu.core_type<tc>, window_params = [{transform_indices = @transform_0, window_bounds = array<i64: 1, 8, 32>}, {transform_indices = @transform_1, window_bounds = array<i64: 1, 8, 32>}, {pipeline_mode = #tpu.pipeline_mode<synchronous>, transform_indices = @transform_2, window_bounds = array<i64: 32, 32>}, {pipeline_mode = #tpu.pipeline_mode<synchronous>, transform_indices = @transform_3, window_bounds = array<i64: 1, 32>}, {pipeline_mode = #tpu.pipeline_mode<synchronous>, transform_indices = @transform_4, window_bounds = array<i64: 32, 32>}, {pipeline_mode = #tpu.pipeline_mode<synchronous>, transform_indices = @transform_5, window_bounds = array<i64: 1, 32>}, {pipeline_mode = #tpu.pipeline_mode<synchronous>, transform_indices = @transform_6, window_bounds = array<i64: 32, 32>}, {pipeline_mode = #tpu.pipeline_mode<synchronous>, transform_indices = @transform_7, window_bounds = array<i64: 1, 32>}, {transform_indices = @transform_8, window_bounds = array<i64: 1, 8, 32>}]} {
    %c0 = arith.constant 0 : index
    %c0_0 = arith.constant 0 : index
    %c0_1 = arith.constant 0 : index
    %0 = vector.load %arg2[%c0, %c0_0, %c0_1] : memref<1x8x32xbf16, #tpu.memory_space<vmem>>, vector<1x8x32xbf16>
    %1 = vector.shape_cast %0 : vector<1x8x32xbf16> to vector<8x32xbf16>
    %c0_2 = arith.constant 0 : index
    %c0_3 = arith.constant 0 : index
    %c0_4 = arith.constant 0 : index
    %2 = vector.load %arg3[%c0_2, %c0_3, %c0_4] : memref<1x8x32xbf16, #tpu.memory_space<vmem>>, vector<1x8x32xbf16>
    %3 = vector.shape_cast %2 : vector<1x8x32xbf16> to vector<8x32xbf16>
    %c0_5 = arith.constant 0 : index
    %c0_6 = arith.constant 0 : index
    %4 = vector.load %arg4[%c0_5, %c0_6] : memref<32x32xbf16, #tpu.memory_space<vmem>>, vector<32x32xbf16>
    %cst = arith.constant dense<0.000000e+00> : vector<8x32xf32>
    %5 = tpu.matmul %1, %4, %cst {dimension_numbers = #tpu.dot_dimension_numbers<[1], [0], [0], [1], [0, 0, 1, 1], [], []>} : vector<8x32xbf16>, vector<32x32xbf16>, vector<8x32xf32> -> vector<8x32xf32>
    %c0_7 = arith.constant 0 : index
    %c0_8 = arith.constant 0 : index
    %6 = vector.load %arg5[%c0_7, %c0_8] : memref<1x32xf32, #tpu.memory_space<vmem>>, vector<1x32xf32>
    %7 = vector.broadcast %6 : vector<1x32xf32> to vector<8x32xf32>
    %8 = arith.addf %5, %7 : vector<8x32xf32>
    %c0_9 = arith.constant 0 : index
    %c0_10 = arith.constant 0 : index
    %9 = vector.load %arg6[%c0_9, %c0_10] : memref<32x32xbf16, #tpu.memory_space<vmem>>, vector<32x32xbf16>
    %cst_11 = arith.constant dense<0.000000e+00> : vector<8x32xf32>
    %10 = tpu.matmul %3, %9, %cst_11 {dimension_numbers = #tpu.dot_dimension_numbers<[1], [0], [0], [1], [0, 0, 1, 1], [], []>} : vector<8x32xbf16>, vector<32x32xbf16>, vector<8x32xf32> -> vector<8x32xf32>
    %c0_12 = arith.constant 0 : index
    %c0_13 = arith.constant 0 : index
    %11 = vector.load %arg7[%c0_12, %c0_13] : memref<1x32xf32, #tpu.memory_space<vmem>>, vector<1x32xf32>
    %12 = vector.broadcast %11 : vector<1x32xf32> to vector<8x32xf32>
    %13 = arith.addf %10, %12 : vector<8x32xf32>
    %c0_14 = arith.constant 0 : index
    %c0_15 = arith.constant 0 : index
    %14 = vector.load %arg8[%c0_14, %c0_15] : memref<32x32xbf16, #tpu.memory_space<vmem>>, vector<32x32xbf16>
    %cst_16 = arith.constant dense<0.000000e+00> : vector<8x32xf32>
    %15 = tpu.matmul %3, %14, %cst_16 {dimension_numbers = #tpu.dot_dimension_numbers<[1], [0], [0], [1], [0, 0, 1, 1], [], []>} : vector<8x32xbf16>, vector<32x32xbf16>, vector<8x32xf32> -> vector<8x32xf32>
    %c0_17 = arith.constant 0 : index
    %c0_18 = arith.constant 0 : index
    %16 = vector.load %arg9[%c0_17, %c0_18] : memref<1x32xf32, #tpu.memory_space<vmem>>, vector<1x32xf32>
    %17 = vector.broadcast %16 : vector<1x32xf32> to vector<8x32xf32>
    %18 = arith.addf %15, %17 : vector<8x32xf32>
    %cst_19 = arith.constant 0.353553385 : f32
    %19 = vector.broadcast %cst_19 : f32 to vector<8x32xf32>
    %20 = arith.mulf %8, %19 : vector<8x32xf32>
    %21 = arith.truncf %20 : vector<8x32xf32> to vector<8x32xbf16>
    %22 = tpu.transpose %13, [1, 0] : vector<8x32xf32> -> vector<32x8xf32>
    %23 = arith.truncf %22 : vector<32x8xf32> to vector<32x8xbf16>
    %24 = arith.truncf %18 : vector<8x32xf32> to vector<8x32xbf16>
    %25 = vector.extract_strided_slice %21 {offsets = [0, 0], sizes = [8, 8], strides = [1, 1]} : vector<8x32xbf16> to vector<8x8xbf16>
    %26 = vector.extract_strided_slice %23 {offsets = [0, 0], sizes = [8, 8], strides = [1, 1]} : vector<32x8xbf16> to vector<8x8xbf16>
    %27 = vector.extract_strided_slice %24 {offsets = [0, 0], sizes = [8, 8], strides = [1, 1]} : vector<8x32xbf16> to vector<8x8xbf16>
    %cst_20 = arith.constant dense<0.000000e+00> : vector<8x8xf32>
    %28 = tpu.matmul %25, %26, %cst_20 {dimension_numbers = #tpu.dot_dimension_numbers<[1], [0], [0], [1], [0, 0, 1, 1], [], []>} : vector<8x8xbf16>, vector<8x8xbf16>, vector<8x8xf32> -> vector<8x8xf32>
    %cst_21 = arith.constant dense<0xFF800000> : vector<8xf32>
    %29 = vector.multi_reduction <maximumf>, %28, %cst_21 [1] : vector<8x8xf32> to vector<8xf32>
    %30 = vector.shape_cast %29 : vector<8xf32> to vector<8x1xf32>
    %31 = vector.broadcast %30 : vector<8x1xf32> to vector<8x8xf32>
    %32 = arith.subf %28, %31 : vector<8x8xf32>
    %33 = math.exp %32 : vector<8x8xf32>
    %cst_22 = arith.constant dense<0.000000e+00> : vector<8xf32>
    %34 = vector.multi_reduction <add>, %33, %cst_22 [1] : vector<8x8xf32> to vector<8xf32>
    %35 = vector.shape_cast %34 : vector<8xf32> to vector<8x1xf32>
    %36 = tpu.reciprocal %35 {approx = true} : vector<8x1xf32> -> vector<8x1xf32>
    %37 = arith.mulf %35, %36 : vector<8x1xf32>
    %cst_23 = arith.constant 2.000000e+00 : f32
    %38 = vector.broadcast %cst_23 : f32 to vector<8x1xf32>
    %39 = arith.subf %38, %37 : vector<8x1xf32>
    %40 = arith.mulf %36, %39 : vector<8x1xf32>
    %41 = vector.broadcast %40 : vector<8x1xf32> to vector<8x8xf32>
    %42 = arith.mulf %33, %41 : vector<8x8xf32>
    %43 = arith.truncf %42 : vector<8x8xf32> to vector<8x8xbf16>
    %cst_24 = arith.constant dense<0.000000e+00> : vector<8x8xf32>
    %44 = tpu.matmul %43, %27, %cst_24 {dimension_numbers = #tpu.dot_dimension_numbers<[1], [0], [0], [1], [0, 0, 1, 1], [], []>} : vector<8x8xbf16>, vector<8x8xbf16>, vector<8x8xf32> -> vector<8x8xf32>
    %45 = vector.extract_strided_slice %21 {offsets = [0, 8], sizes = [8, 8], strides = [1, 1]} : vector<8x32xbf16> to vector<8x8xbf16>
    %46 = vector.extract_strided_slice %23 {offsets = [8, 0], sizes = [8, 8], strides = [1, 1]} : vector<32x8xbf16> to vector<8x8xbf16>
    %47 = vector.extract_strided_slice %24 {offsets = [0, 8], sizes = [8, 8], strides = [1, 1]} : vector<8x32xbf16> to vector<8x8xbf16>
    %cst_25 = arith.constant dense<0.000000e+00> : vector<8x8xf32>
    %48 = tpu.matmul %45, %46, %cst_25 {dimension_numbers = #tpu.dot_dimension_numbers<[1], [0], [0], [1], [0, 0, 1, 1], [], []>} : vector<8x8xbf16>, vector<8x8xbf16>, vector<8x8xf32> -> vector<8x8xf32>
    %cst_26 = arith.constant dense<0xFF800000> : vector<8xf32>
    %49 = vector.multi_reduction <maximumf>, %48, %cst_26 [1] : vector<8x8xf32> to vector<8xf32>
    %50 = vector.shape_cast %49 : vector<8xf32> to vector<8x1xf32>
    %51 = vector.broadcast %50 : vector<8x1xf32> to vector<8x8xf32>
    %52 = arith.subf %48, %51 : vector<8x8xf32>
    %53 = math.exp %52 : vector<8x8xf32>
    %cst_27 = arith.constant dense<0.000000e+00> : vector<8xf32>
    %54 = vector.multi_reduction <add>, %53, %cst_27 [1] : vector<8x8xf32> to vector<8xf32>
    %55 = vector.shape_cast %54 : vector<8xf32> to vector<8x1xf32>
    %56 = tpu.reciprocal %55 {approx = true} : vector<8x1xf32> -> vector<8x1xf32>
    %57 = arith.mulf %55, %56 : vector<8x1xf32>
    %cst_28 = arith.constant 2.000000e+00 : f32
    %58 = vector.broadcast %cst_28 : f32 to vector<8x1xf32>
    %59 = arith.subf %58, %57 : vector<8x1xf32>
    %60 = arith.mulf %56, %59 : vector<8x1xf32>
    %61 = vector.broadcast %60 : vector<8x1xf32> to vector<8x8xf32>
    %62 = arith.mulf %53, %61 : vector<8x8xf32>
    %63 = arith.truncf %62 : vector<8x8xf32> to vector<8x8xbf16>
    %cst_29 = arith.constant dense<0.000000e+00> : vector<8x8xf32>
    %64 = tpu.matmul %63, %47, %cst_29 {dimension_numbers = #tpu.dot_dimension_numbers<[1], [0], [0], [1], [0, 0, 1, 1], [], []>} : vector<8x8xbf16>, vector<8x8xbf16>, vector<8x8xf32> -> vector<8x8xf32>
    %65 = vector.extract_strided_slice %21 {offsets = [0, 16], sizes = [8, 8], strides = [1, 1]} : vector<8x32xbf16> to vector<8x8xbf16>
    %66 = vector.extract_strided_slice %23 {offsets = [16, 0], sizes = [8, 8], strides = [1, 1]} : vector<32x8xbf16> to vector<8x8xbf16>
    %67 = vector.extract_strided_slice %24 {offsets = [0, 16], sizes = [8, 8], strides = [1, 1]} : vector<8x32xbf16> to vector<8x8xbf16>
    %cst_30 = arith.constant dense<0.000000e+00> : vector<8x8xf32>
    %68 = tpu.matmul %65, %66, %cst_30 {dimension_numbers = #tpu.dot_dimension_numbers<[1], [0], [0], [1], [0, 0, 1, 1], [], []>} : vector<8x8xbf16>, vector<8x8xbf16>, vector<8x8xf32> -> vector<8x8xf32>
    %cst_31 = arith.constant dense<0xFF800000> : vector<8xf32>
    %69 = vector.multi_reduction <maximumf>, %68, %cst_31 [1] : vector<8x8xf32> to vector<8xf32>
    %70 = vector.shape_cast %69 : vector<8xf32> to vector<8x1xf32>
    %71 = vector.broadcast %70 : vector<8x1xf32> to vector<8x8xf32>
    %72 = arith.subf %68, %71 : vector<8x8xf32>
    %73 = math.exp %72 : vector<8x8xf32>
    %cst_32 = arith.constant dense<0.000000e+00> : vector<8xf32>
    %74 = vector.multi_reduction <add>, %73, %cst_32 [1] : vector<8x8xf32> to vector<8xf32>
    %75 = vector.shape_cast %74 : vector<8xf32> to vector<8x1xf32>
    %76 = tpu.reciprocal %75 {approx = true} : vector<8x1xf32> -> vector<8x1xf32>
    %77 = arith.mulf %75, %76 : vector<8x1xf32>
    %cst_33 = arith.constant 2.000000e+00 : f32
    %78 = vector.broadcast %cst_33 : f32 to vector<8x1xf32>
    %79 = arith.subf %78, %77 : vector<8x1xf32>
    %80 = arith.mulf %76, %79 : vector<8x1xf32>
    %81 = vector.broadcast %80 : vector<8x1xf32> to vector<8x8xf32>
    %82 = arith.mulf %73, %81 : vector<8x8xf32>
    %83 = arith.truncf %82 : vector<8x8xf32> to vector<8x8xbf16>
    %cst_34 = arith.constant dense<0.000000e+00> : vector<8x8xf32>
    %84 = tpu.matmul %83, %67, %cst_34 {dimension_numbers = #tpu.dot_dimension_numbers<[1], [0], [0], [1], [0, 0, 1, 1], [], []>} : vector<8x8xbf16>, vector<8x8xbf16>, vector<8x8xf32> -> vector<8x8xf32>
    %85 = vector.extract_strided_slice %21 {offsets = [0, 24], sizes = [8, 8], strides = [1, 1]} : vector<8x32xbf16> to vector<8x8xbf16>
    %86 = vector.extract_strided_slice %23 {offsets = [24, 0], sizes = [8, 8], strides = [1, 1]} : vector<32x8xbf16> to vector<8x8xbf16>
    %87 = vector.extract_strided_slice %24 {offsets = [0, 24], sizes = [8, 8], strides = [1, 1]} : vector<8x32xbf16> to vector<8x8xbf16>
    %cst_35 = arith.constant dense<0.000000e+00> : vector<8x8xf32>
    %88 = tpu.matmul %85, %86, %cst_35 {dimension_numbers = #tpu.dot_dimension_numbers<[1], [0], [0], [1], [0, 0, 1, 1], [], []>} : vector<8x8xbf16>, vector<8x8xbf16>, vector<8x8xf32> -> vector<8x8xf32>
    %cst_36 = arith.constant dense<0xFF800000> : vector<8xf32>
    %89 = vector.multi_reduction <maximumf>, %88, %cst_36 [1] : vector<8x8xf32> to vector<8xf32>
    %90 = vector.shape_cast %89 : vector<8xf32> to vector<8x1xf32>
    %91 = vector.broadcast %90 : vector<8x1xf32> to vector<8x8xf32>
    %92 = arith.subf %88, %91 : vector<8x8xf32>
    %93 = math.exp %92 : vector<8x8xf32>
    %cst_37 = arith.constant dense<0.000000e+00> : vector<8xf32>
    %94 = vector.multi_reduction <add>, %93, %cst_37 [1] : vector<8x8xf32> to vector<8xf32>
    %95 = vector.shape_cast %94 : vector<8xf32> to vector<8x1xf32>
    %96 = tpu.reciprocal %95 {approx = true} : vector<8x1xf32> -> vector<8x1xf32>
    %97 = arith.mulf %95, %96 : vector<8x1xf32>
    %cst_38 = arith.constant 2.000000e+00 : f32
    %98 = vector.broadcast %cst_38 : f32 to vector<8x1xf32>
    %99 = arith.subf %98, %97 : vector<8x1xf32>
    %100 = arith.mulf %96, %99 : vector<8x1xf32>
    %101 = vector.broadcast %100 : vector<8x1xf32> to vector<8x8xf32>
    %102 = arith.mulf %93, %101 : vector<8x8xf32>
    %103 = arith.truncf %102 : vector<8x8xf32> to vector<8x8xbf16>
    %cst_39 = arith.constant dense<0.000000e+00> : vector<8x8xf32>
    %104 = tpu.matmul %103, %87, %cst_39 {dimension_numbers = #tpu.dot_dimension_numbers<[1], [0], [0], [1], [0, 0, 1, 1], [], []>} : vector<8x8xbf16>, vector<8x8xbf16>, vector<8x8xf32> -> vector<8x8xf32>
    %105 = tpu.concatenate %44, %64, %84, %104 in 1 : vector<8x8xf32>, vector<8x8xf32>, vector<8x8xf32>, vector<8x8xf32> -> vector<8x32xf32>
    %c0_40 = arith.constant 0 : index
    %c0_41 = arith.constant 0 : index
    %c0_42 = arith.constant 0 : index
    %106 = vector.load %arg10[%c0_40, %c0_41, %c0_42] : memref<1x8x32xf32, #tpu.memory_space<vmem>>, vector<1x8x32xf32>
    %107 = vector.shape_cast %106 : vector<1x8x32xf32> to vector<8x32xf32>
    %108 = vector.shape_cast %105 : vector<8x32xf32> to vector<1x8x32xf32>
    tpu.vector_store %arg10[%c0_40, %c0_41, %c0_42], %108 {strides = array<i32>} : memref<1x8x32xf32, #tpu.memory_space<vmem>>, vector<1x8x32xf32>,
    return
  }
  func.func @transform_0(%arg0: i32, %arg1: i32) -> (i32, i32, i32) {
    %c0_i32 = arith.constant 0 : i32
    %c0_i32_0 = arith.constant 0 : i32
    return %arg0, %arg1, %c0_i32 : i32, i32, i32
  }
  func.func @transform_1(%arg0: i32, %arg1: i32) -> (i32, i32, i32) {
    %c0_i32 = arith.constant 0 : i32
    %c0_i32_0 = arith.constant 0 : i32
    %c0_i32_1 = arith.constant 0 : i32
    return %arg0, %c0_i32, %c0_i32_0 : i32, i32, i32
  }
  func.func @transform_2(%arg0: i32, %arg1: i32) -> (i32, i32) {
    %c0_i32 = arith.constant 0 : i32
    %c0_i32_0 = arith.constant 0 : i32
    %c0_i32_1 = arith.constant 0 : i32
    return %c0_i32, %c0_i32_0 : i32, i32
  }
  func.func @transform_3(%arg0: i32, %arg1: i32) -> (i32, i32) {
    %c0_i32 = arith.constant 0 : i32
    %c0_i32_0 = arith.constant 0 : i32
    %c0_i32_1 = arith.constant 0 : i32
    return %c0_i32, %c0_i32_0 : i32, i32
  }
  func.func @transform_4(%arg0: i32, %arg1: i32) -> (i32, i32) {
    %c0_i32 = arith.constant 0 : i32
    %c0_i32_0 = arith.constant 0 : i32
    %c0_i32_1 = arith.constant 0 : i32
    return %c0_i32, %c0_i32_0 : i32, i32
  }
  func.func @transform_5(%arg0: i32, %arg1: i32) -> (i32, i32) {
    %c0_i32 = arith.constant 0 : i32
    %c0_i32_0 = arith.constant 0 : i32
    %c0_i32_1 = arith.constant 0 : i32
    return %c0_i32, %c0_i32_0 : i32, i32
  }
  func.func @transform_6(%arg0: i32, %arg1: i32) -> (i32, i32) {
    %c0_i32 = arith.constant 0 : i32
    %c0_i32_0 = arith.constant 0 : i32
    %c0_i32_1 = arith.constant 0 : i32
    return %c0_i32, %c0_i32_0 : i32, i32
  }
  func.func @transform_7(%arg0: i32, %arg1: i32) -> (i32, i32) {
    %c0_i32 = arith.constant 0 : i32
    %c0_i32_0 = arith.constant 0 : i32
    %c0_i32_1 = arith.constant 0 : i32
    return %c0_i32, %c0_i32_0 : i32, i32
  }
  func.func @transform_8(%arg0: i32, %arg1: i32) -> (i32, i32, i32) {
    %c0_i32 = arith.constant 0 : i32
    %c0_i32_0 = arith.constant 0 : i32
    return %arg0, %arg1, %c0_i32 : i32, i32, i32
  }
}

</mosaic_0001>

<bundles_post_ra>
// kernel: tpu_custom_call.1
= control target key start
LH: loop header
LB: loop body
LE: loop exit
PB: predicated region body
PF: predicated region fallthrough
CT: control target
= control target key end

     0   :  { %s2143_s0 = inlined_call_operand.hbm [shape: bf16[2,8,32], index: 0, kind: input, shape index: {}]   ;;  %s2144_s1 = inlined_call_operand.hbm [shape: bf16[2,8,32], index: 1, kind: input, shape index: {}]   ;;  %s2145_s2 = inlined_call_operand.hbm [shape: bf16[32,32], index: 2, kind: input, shape index: {}]   ;;  %s2146_s3 = inlined_call_operand.vmem [shape: f32[1,32], index: 3, kind: input, shape index: {}]   ;;  %s2147_s4 = inlined_call_operand.hbm [shape: bf16[32,32], index: 4, kind: input, shape index: {}]   ;;  %s2148_s5 = inlined_call_operand.vmem [shape: f32[1,32], index: 5, kind: input, shape index: {}]   ;;  %s2149_s6 = inlined_call_operand.vmem [shape: bf16[32,32], index: 6, kind: input, shape index: {}]   ;;  %s2150_s7 = inlined_call_operand.vmem [shape: f32[1,32], index: 7, kind: input, shape index: {}]   ;;  %s2151_s8 = inlined_call_operand.hbm [shape: f32[2,8,32], index: 8, kind: output, shape index: {}]  }
   0x1   :  { %2160 = sst [smem:[#allocation21_spill]] %s2145_s2 }
   0x2   :  { %2161 = sst [smem:[#allocation22_spill]] %s2147_s4 }
   0x3   :  { %13 = vsyncpa [#allocation3], 0 }
   0x4   :  { %15 = vsyncpa [#allocation3 + $0x1], 0 }
   0x5   :  { %16 = vsyncpa [#allocation6], 0 }
   0x6   :  { %18 = vsyncpa [#allocation6 + $0x1], 0 }
   0x7   :  { %19 = vsyncpa [#allocation9], 0 }
   0x8   :  { %20 = vsyncpa [#allocation4], 0 }
   0x9   :  { %22 = vsyncpa [#allocation4 + $0x1], 0  ;;  %s1772_s27 = smov 0   ;;  %s1774_s28 = smov 0  }
   0xa   :  { %s1776_s29 = smov 0   ;;  %s1778_s30 = smov 0  }
   0xb   :  { %s1780_s9 = smov 0   ;;  %s1782_s10 = smov 0  }
   0xc LB: > { %2162 = sst [smem:[#allocation16_spill]] %s1690_s27  ;;  %s1803_s11 = sadd.s32 4294967295, %s1710_s10   ;;  %s1710_s10 = sphi %s1782_s10, %s28_s10   ;;  %s1706_s9 = sphi %s1780_s9, %s2189_s9   ;;  %s1702_s30 = sphi %s1778_s30, %s2188_s30   ;;  %s1698_s29 = sphi %s1776_s29, %s2192_s29   ;;  %s1694_s28 = sphi %s1774_s28, %s2191_s28   ;;  %s1690_s27 = sphi %s1772_s27, %s2190_s27  }
   0xd   : > { %2163 = sst [smem:[#allocation17_spill]] %s1706_s9  ;;  %s1244_s12 = sadd.s32 4294967294, %s1710_s10  }
   0xe   : > { %p62_p0 = scmp.ne.s32.totalorder %s1694_s28, %s1690_s27  ;;  %p2152_p1 = scmp.eq.s32.totalorder %s1803_s11, 0 }
   0xf   : > { %p246_p3 = scmp.eq.s32.totalorder %s1244_s12, 1  ;;  %p1245_p5 = scmp.ge.s32.totalorder %s1710_s10, 1 }
  0x10   : > { %p1812_p4 = por %p2152_p1, %p62_p0  ;;  %p253_p7 = scmp.lt.s32.totalorder %s1710_s10, 3 }
  0x11   : > { %p1817_p6 = por %p246_p3, %p62_p0  ;;  %s1712_s16 = smov [#allocation7]  }
  0x12   : > { %s2164_s13 = scalar_select %p1812_p4, 1, 0 }
  0x13   : > { %s2165_s14 = scalar_select %p1817_p6, 1, 0 }
  0x14   : > { %p1822_p8 = pnand %p1245_p5, %p253_p7  ;;  %s265_s17 = sshll.u32 %s1712_s16, 4  ;;  %s1826_s17 = int_to_ptr.vmem [resolvable:$true] %s265_s17 }
  0x15   : > { %2166 = sst [smem:[#allocation18_spill]] %s2165_s14  ;;  %s1713_s19 = smov [#allocation8]  }
  0x16   : > { %s2167_s15 = scalar_select %p1822_p8, 1, 0 }
  0x17   : > { %p1394_p9 = pneg %p1822_p8  ;;  %s281_s20 = sshll.u32 %s1713_s19, 4  ;;  %s1837_s20 = int_to_ptr.vmem [resolvable:$true] %s281_s20 }
  0x18   : > { %s2169_s2 = sld [smem:[#allocation21_spill]] }
  0x19   : > { %p1833_p11 = pnand %p1394_p9, %p2152_p1 }
  0x1b   : > { %p1502_p13 = pneg %p1833_p11 }
  0x1e   : > { %s1500_s23 = scalar_lea.hbm %s2169_s2, 256 }
  0x1f   : > { %p1501_p12 = scmp.ne.s32.totalorder %s2169_s2, %s1500_s23  ;;  %p1507_p5 = scmp.lt.u32.totalorder %s1500_s23, %s2169_s2 }
  0x21   : > { %p1503_p0 = pnand %p1502_p13, %p1501_p12 }
  0x23   : > { %p1504_p3 = pneg %p1503_p0 }
  0x25   : > { %p1509_p7 = pnand %p1507_p5, %p1504_p3 }
  0x27   : > { %1512 = shalt.err (!%p1509_p7)
}
  0x28   : > { %s1513_s16 = scalar_lea.vmem %s1826_s17, 256  ;;  %p1521_p2 = scmp.lt.s32.totalorder %s1826_s17, %s1826_s17 }
  0x29   : > { %p1514_p9 = scmp.ne.s32.totalorder %s1826_s17, %s1513_s16  ;;  %p1522_p12 = scmp.lt.s32.totalorder %s1513_s16, %s1513_s16 }
  0x2b   : > { %p1516_p10 = pnand %p1514_p9, %p1502_p13  ;;  %p1523_p0 = por %p1522_p12, %p1521_p2 }
  0x2d   : > { %p1517_p1 = pneg %p1516_p10 }
  0x2f   : > { %p1524_p6 = pnand %p1523_p0, %p1517_p1 }
  0x31   : > { %1527 = shalt.err (!%p1524_p6)
}
  0x32   : > { %s1714_s19 = smov 64   ;;  %s1715_s21 = smov 4  }
  0x33   : > { %1397 = dma.hbm_to_vmem [thread:$0]  (!%p1833_p11), %s2169_s2, 256, %s1826_s17, [#allocation6], %s1714_s19, %s1714_s19, %s1715_s21  }
  0x34   : > { %s2170_s4 = sld [smem:[#allocation22_spill]] }
  0x3a   : > { %s1528_s26 = scalar_lea.hbm %s2170_s4, 256 }
  0x3b   : > { %p1529_p2 = scmp.ne.s32.totalorder %s2170_s4, %s1528_s26  ;;  %p1535_p10 = scmp.lt.u32.totalorder %s1528_s26, %s2170_s4 }
  0x3d   : > { %p1531_p1 = pnand %p1529_p2, %p1502_p13 }
  0x3f   : > { %p1532_p6 = pneg %p1531_p1 }
  0x41   : > { %p1537_p3 = pnand %p1535_p10, %p1532_p6 }
  0x43   : > { %1540 = shalt.err (!%p1537_p3)
}
  0x44   : > { %s1541_s17 = scalar_lea.vmem %s1837_s20, 256  ;;  %p1549_p12 = scmp.lt.s32.totalorder %s1837_s20, %s1837_s20 }
  0x45   : > { %p1542_p5 = scmp.ne.s32.totalorder %s1837_s20, %s1541_s17  ;;  %p1550_p0 = scmp.lt.s32.totalorder %s1541_s17, %s1541_s17 }
  0x47   : > { %p1544_p7 = pnand %p1542_p5, %p1502_p13  ;;  %p1551_p2 = por %p1550_p0, %p1549_p12 }
  0x49   : > { %p1545_p9 = pneg %p1544_p7 }
  0x4b   : > { %p1552_p1 = pnand %p1551_p2, %p1545_p9 }
  0x4d   : > { %1555 = shalt.err (!%p1552_p1)
}
  0x4e   : > { %1400 = dma.hbm_to_vmem [thread:$0]  (!%p1833_p11), %s2170_s4, 256, %s1837_s20, [#allocation9], %s1714_s19, %s1714_s19, %s1715_s21  }
  0x4f   : > { %s40_s22 = sadd.s32 1, %s1706_s9  ;;  %s49_s23 = sadd.s32 1, %s1698_s29 }
  0x50   : > { %p42_p13 = scmp.ge.s32.totalorder %s40_s22, 2  ;;  %p56_p6 = scmp.ne.s32.totalorder %s1698_s29, %s1694_s28 }
  0x51   : > { %p57_p10 = scmp.eq.s32.totalorder %s1710_s10, 0  ;;  %p1414_p3 = scmp.lt.s32.totalorder %s1710_s10, 2 }
  0x52   : > { %s2194_s22 = smov (%p42_p13, %s40_s22), 0  ;;  %p2172_p7 = scmp.eq.s32.totalorder %s1803_s11, 1 }
  0x53   : > { %2171 = sst [smem:[#allocation19_spill]] %s2194_s22  ;;  %p58_p5 = por %p57_p10, %p56_p6 }
  0x54   : > { %p1901_p9 = por %p2172_p7, %p56_p6  ;;  %s44_s24 = ssub.s32 %s1706_s9, %s2194_s22 }
  0x55   : > { %s304_s25 = sand.u32 1, %s1698_s29   ;;  %p47_p12 = scmp.eq.s32.totalorder %s44_s24, 0 }
  0x56   : > { %s2173_s18 = scalar_select %p1901_p9, 1, 0 }
  0x57   : > { %s1908_s20 = sshll.u32 %s304_s25, 2  ;;  %s1250_s19 = sshll.u32 %s1706_s9, 6 }
  0x58   : > { %s1912_s21 = scalar_select %p47_p12, %s1698_s29, %s49_s23  }
  0x59   : > { %s1917_s16 = scalar_lea.hbm %s2143_s0, %s1250_s19  ;;  %s308_s17 = scalar_lea.vmem [#allocation2], %s1908_s20 }
  0x5a   : > { %2174 = sst [smem:[#allocation20_spill]] %s1912_s21  ;;  %s316_s27 = sshll.u32 %s308_s17, 4  ;;  %s1926_s27 = int_to_ptr.vmem [resolvable:$true] %s316_s27 }
  0x5b   : > { %p1922_p11 = pnand %p1414_p3, %p58_p5  ;;  %s1931_s26 = scalar_lea.hbm %s2144_s1, %s1250_s19 }
  0x5c   : > { %s305_s12 = scalar_lea.sflag [#allocation3], %s304_s25  ;;  %s1556_s2 = scalar_lea.hbm %s1917_s16, 64 }
  0x5d   : > { %p1557_p0 = scmp.ne.s32.totalorder %s1917_s16, %s1556_s2  ;;  %p1558_p2 = pneg %p1922_p11 }
  0x5e   : > { %s1561_s22 = scalar_lea.hbm %s2143_s0, 128  ;;  %p1562_p6 = scmp.lt.u32.totalorder %s1917_s16, %s2143_s0 }
  0x5f   : > { %p1559_p1 = pnand %p1558_p2, %p1557_p0  ;;  %p1563_p10 = scmp.lt.u32.totalorder %s1561_s22, %s1556_s2 }
  0x60   : > { %p1565_p5 = scmp.lt.u32.totalorder %s1556_s2, %s1917_s16 }
  0x61   : > { %p1560_p13 = pneg %p1559_p1  ;;  %p1564_p3 = por %p1563_p10, %p1562_p6 }
  0x63   : > { %p1566_p7 = por %p1565_p5, %p1564_p3 }
  0x65   : > { %p1567_p12 = pnand %p1566_p7, %p1560_p13 }
  0x67   : > { %1570 = shalt.err (!%p1567_p12)
}
  0x68   : > { %s1571_s25 = scalar_lea.vmem %s1926_s27, 64  ;;  %s1716_s4 = smov [#allocation2]  }
  0x69   : > { %p1572_p0 = scmp.ne.s32.totalorder %s1926_s27, %s1571_s25  ;;  %s1576_s19 = sshll.u32 %s1716_s4, 4  ;;  %s1577_s19 = int_to_ptr.vmem [resolvable:$false] %s1576_s19 }
  0x6a   : > { %s1578_s9 = scalar_lea.vmem %s1577_s19, 128  ;;  %p1579_p4 = scmp.lt.s32.totalorder %s1926_s27, %s1577_s19 }
  0x6b   : > { %p1574_p1 = pnand %p1572_p0, %p1558_p2  ;;  %p1580_p6 = scmp.lt.s32.totalorder %s1578_s9, %s1571_s25 }
  0x6d   : > { %p1575_p9 = pneg %p1574_p1  ;;  %p1581_p10 = por %p1580_p6, %p1579_p4 }
  0x6f   : > { %p1582_p3 = pnand %p1581_p10, %p1575_p9 }
  0x71   : > { %1585 = shalt.err (!%p1582_p3)
}
  0x72   : > { %1404 = dma.hbm_to_vmem [thread:$0]  (!%p1922_p11), %s1917_s16, 64, %s1926_s27, %s305_s12  }
  0x73   : > { %s323_s2 = sand.u32 1, %s1710_s10   ;;  %s327_s22 = scalar_lea.vmem [#allocation5], %s1908_s20 }
  0x74   : > { %s334_s21 = sshll.u32 %s327_s22, 4  ;;  %s324_s23 = scalar_lea.sflag [#allocation6], %s323_s2  ;;  %s335_s21 = int_to_ptr.vmem [resolvable:$true] %s334_s21 }
  0x75   : > { %s1586_s24 = scalar_lea.hbm %s1931_s26, 64  ;;  %s1591_s4 = scalar_lea.hbm %s2144_s1, 128 }
  0x76   : > { %p1587_p4 = scmp.ne.s32.totalorder %s1931_s26, %s1586_s24  ;;  %p1592_p5 = scmp.lt.u32.totalorder %s1931_s26, %s2144_s1 }
  0x77   : > { %p1593_p7 = scmp.lt.u32.totalorder %s1591_s4, %s1586_s24  ;;  %p1595_p0 = scmp.lt.u32.totalorder %s1586_s24, %s1931_s26 }
  0x78   : > { %p1589_p9 = pnand %p1587_p4, %p1558_p2 }
  0x79   : > { %p1594_p12 = por %p1593_p7, %p1592_p5 }
  0x7a   : > { %p1590_p13 = pneg %p1589_p9 }
  0x7b   : > { %p1596_p1 = por %p1595_p0, %p1594_p12 }
  0x7d   : > { %p1597_p6 = pnand %p1596_p1, %p1590_p13 }
  0x7f   : > { %1600 = shalt.err (!%p1597_p6)
}
  0x80   : > { %s1601_s20 = scalar_lea.vmem %s335_s21, 64  ;;  %s1717_s16 = smov [#allocation5]  }
  0x81   : > { %p1602_p10 = scmp.ne.s32.totalorder %s335_s21, %s1601_s20  ;;  %s1606_s27 = sshll.u32 %s1717_s16, 4  ;;  %s1607_s27 = int_to_ptr.vmem [resolvable:$false] %s1606_s27 }
  0x82   : > { %s1608_s12 = scalar_lea.vmem %s1607_s27, 128  ;;  %p1609_p9 = scmp.lt.s32.totalorder %s335_s21, %s1607_s27 }
  0x83   : > { %p1604_p3 = pnand %p1602_p10, %p1558_p2  ;;  %p1610_p8 = scmp.lt.s32.totalorder %s1608_s12, %s1601_s20 }
  0x85   : > { %p1605_p4 = pneg %p1604_p3  ;;  %p1611_p5 = por %p1610_p8, %p1609_p9 }
  0x87   : > { %p1612_p7 = pnand %p1611_p5, %p1605_p4 }
  0x89   : > { %1615 = shalt.err (!%p1612_p7)
}
  0x8a   : > { %1407 = dma.hbm_to_vmem [thread:$0]  (!%p1922_p11), %s1931_s26, 64, %s335_s21, %s324_s23  }
  0x8b   : > { %p2176_p13 = scmp.ne.s32.totalorder %s2167_s15, 0 }
  0x8c   : > { %s1982_s2 = sand.u32 (!%p2176_p13), 1, %s1694_s28   ;;  %p2177_p2 = scmp.ne.s32.totalorder (!%p2176_p13), %s2164_s13, 0 }
  0x8d   : > { %343 = sbr.rel (%p2176_p13) target bundleno = 1500 (0x5dc), region = 52  ;;  %s1254_s22 = sshll.u32 (!%p2176_p13), %s1982_s2, 2 }
  0x8e   : > { %s346_s24 = scalar_lea.sflag (!%p2176_p13), [#allocation3], %s1982_s2  ;;  %s349_s17 = scalar_lea.vmem (!%p2176_p13), [#allocation2], %s1254_s22 }
  0x94   : > { %1669 = dma.done.wait (%p2177_p2), %s346_s24, 64  }
  0x95   : > { %1671 = vsyncadd (%p2177_p2), %s346_s24, 4294967232  ;;  %s354_s14 = sand.u32 1, %s1803_s11   ;;  %s358_s15 = scalar_lea.vmem [#allocation5], %s1254_s22 }
  0x96   : > { %s355_s26 = scalar_lea.sflag [#allocation6], %s354_s14 }
  0x97   : > { %1673 = dma.done.wait (%p2177_p2), %s355_s26, 64  }
  0x98   : > { %1675 = vsyncadd (%p2177_p2), %s355_s26, 4294967232  ;;  %p2178_p8 = scmp.eq.s32.totalorder %s1803_s11, 0 }
  0x9a   : > { %1677 = dma.done.wait (%p2178_p8), [#allocation6], 256   ;;  %p2179_p11 = pmov %p2178_p8 }
  0x9b   : > { %p2180_p12 = pmov %p2178_p8 }
  0x9c   : > { %1679 = vsyncadd (%p2179_p11), [#allocation6], 4294967040 }
  0x9d   : > { %1681 = dma.done.wait (%p2180_p12), [#allocation9], 256   ;;  %p2181_p0 = pmov %p2178_p8 }
  0x9e   : > { %v1718_v0 = vmov 0.0   ;;  %vm1719_vm0 = vmmov 0   ;;  %v1478_v1 = vld [vmem:[#allocation7] sm:$0xff]   ;;  %v1479_v2 = vld [vmem:[#allocation7 + $0x8] sm:$0xff]   ;;  %v1480_v3 = vld [vmem:[#allocation8] sm:$0xff]   ;;  %vm430_vm1 = vcmask 261120  }
  0x9f   : > { %1683 = vsyncadd (%p2181_p0), [#allocation9], 4294967040  ;;  %1308 = vmatprep.subr.bf16.mxu0 %v1718_v0  ;;  %1312 = vmatprep.mubr.msk.bf16.mxu0 %vm1719_vm0, %v1718_v0  ;;  %v1481_v4 = vld [vmem:[#allocation8 + $0x8] sm:$0xff]   ;;  %v405_v5 = vld [vmem:[%s349_s17] sm:$0xf]  ;;  %s1720_s21 = smov 112  }
  0xa0   : > { %1316 = vmatprep.subr.bf16.mxu1 %v1718_v0  ;;  %1320 = vmatprep.mubr.msk.bf16.mxu1 %vm1719_vm0, %v1718_v0  ;;  %v406_v6 = vld [vmem:[%s358_s15] sm:$0xf]  ;;  %v1259_v7 = vld [vmem:[%s2146_s3] ss:$0 sm:$0xff]  ;;  %s1721_s23 = smov 120   ;;  %s1722_s25 = smov 104  }
  0xa1   : > { %1309 = vmatpush3.bf16.msra.mxu0 %v1478_v1  ;;  %1317 = vmatpush3.bf16.msra.mxu1 %v1480_v3  ;;  %v1263_v19 = vld [vmem:[%s2148_s5] ss:$0 sm:$0xff]  ;;  %v1483_v22 = vld [vmem:[%s2149_s6 + $0x8] sm:$0xff]   ;;  %vm644_vm2 = vcmask 1043456   ;;  %vm640_vm3 = vcmask 64512   ;;  %s1723_s24 = smov 8  }
  0xa2   : > { %1310 = vmatprep.subr.bf16.mxu0 %v1718_v0  ;;  %1318 = vmatprep.subr.bf16.mxu1 %v1718_v0  ;;  %v1482_v21 = vld [vmem:[%s2149_s6] sm:$0xff]   ;;  %s1724_s17 = smov 16   ;;  %s1725_s14 = smov 24   ;;  %vm1101_vm4 = vcmask 130048   ;;  %vm1103_vm5 = vcmask 195584  }
  0xa3   : > { %v1267_v39 = vld [vmem:[%s2150_s7] ss:$0 sm:$0xff]  ;;  %s1258_s26 = sshll.u32 %s1982_s2, 3  ;;  %s1280_s15 = sshll.u32 %s1702_s30, 7 }
  0xa4   : > { %s403_s11 = scalar_lea.vmem [#allocation10], %s1258_s26  ;;  %s1107_s30 = scalar_lea.sflag [#allocation4], %s1982_s2 }
  0xa5   : > { %1311 = vmatpush3.bf16.msra.mxu0 %v1479_v2  ;;  %1319 = vmatpush3.bf16.msra.mxu1 %v1481_v4  ;;  %s1121_s13 = sshll.u32 %s403_s11, 4  ;;  %p2182_p6 = scmp.ne.s32.totalorder %s2173_s18, 0  ;;  %s2095_s13 = int_to_ptr.vmem [resolvable:$true] %s1121_s13 }
  0xa6   : > { %1324 = vmatprep.subr.bf16.mxu0 %v1718_v0  ;;  %1332 = vmatprep.subr.bf16.mxu1 %v1718_v0  ;;  %s1616_s4 = scalar_lea.vmem %s2095_s13, 128  ;;  %s1726_s19 = smov [#allocation10]  }
  0xa7   : > { %p1617_p1 = scmp.ne.s32.totalorder %s2095_s13, %s1616_s4  ;;  %s1620_s9 = sshll.u32 %s1726_s19, 4  ;;  %s1621_s9 = int_to_ptr.vmem [resolvable:$false] %s1620_s9 }
  0xa8   : > { %1313 = vmatmul.mubr.msk.bf16.vlgmr.msra.gmra.mrb[0].mxu0 %vm430_vm1, %v405_v5  ;;  %1321 = vmatmul.mubr.msk.bf16.vlgmr.msra.gmra.mrb[0].mxu1 %vm430_vm1, %v406_v6  ;;  %s1622_s20 = scalar_lea.vmem %s1621_s9, 256  ;;  %p1623_p4 = scmp.lt.s32.totalorder %s2095_s13, %s1621_s9 }
  0xa9   : > { %1328 = vmatprep.mubr.msk.bf16.mxu0 %vm1719_vm0, %v1718_v0  ;;  %1334 = vmatprep.mubr.msk.bf16.mxu1 %vm1719_vm0, %v1718_v0  ;;  %p1618_p10 = pnand %p1617_p1, %p2182_p6  ;;  %p1624_p9 = scmp.lt.s32.totalorder %s1622_s20, %s1616_s4 }
  0xaa   : > { %1325 = vmatpush3.bf16.msra.mxu0 %v1482_v21 }
  0xab   : > { %1326 = vmatprep.subr.bf16.mxu0 %v1718_v0  ;;  %p1619_p3 = pneg %p1618_p10  ;;  %p1625_p5 = por %p1624_p9, %p1623_p4 }
  0xad   : > { %p1626_p7 = pnand %p1625_p5, %p1619_p3 }
  0xae   : > { %1327 = vmatpush3.bf16.msra.mxu0 %v1483_v22 }
  0xaf   : > { %1338 = vmatprep.subr.bf16.mxu0 %v1718_v0 }
  0xb1   : > { %1329 = vmatmul.mubr.msk.bf16.vlgmr.msra.gmra.mrb[4].mxu0 %vm430_vm1, %v406_v6 }
  0xb2   : > { %1340 = vmatprep.mubr.msk.bf16.mxu0 %vm1719_vm0, %v1718_v0 }
 0x17b   : > { %v468_v8 = vpop.f32.mrb[0].mxu0  ;;  %v534_v14 = vpop.f32.mrb[0].mxu1 }
 0x17c   : > { %v469_v9 = vadd.f32 %v1259_v7, %v468_v8  ;;  %v1314_v10 = vpop.f32.mrb[1].mxu0  ;;  %v1322_v15 = vpop.f32.mrb[1].mxu1  ;;  %v535_v20 = vadd.f32 %v1263_v19, %v534_v14 }
 0x17d   : > { %v471_v11 = vpop.f32.mrb[2].mxu0  ;;  %v537_v17 = vpop.f32.mrb[2].mxu1 }
 0x17e   : > { %v603_v12 = vmul.f32 0.35355338, %v469_v9  ;;  %v1315_v13 = vpop.f32.mrb[3].mxu0  ;;  %v1323_v18 = vpop.f32.mrb[3].mxu1 }
 0x180   : > { %v604_v16 = vpack.c.bf16 %v603_v12, %v603_v12 }
 0x182   : > { %864 = vrot.lane.b32.xlu1 %v604_v16, %s1720_s21  ;;  %750 = vrot.lane.b32.xlu0 %v604_v16, %s1721_s23 }
 0x184   : > { %v597_v38 = vpop.f32.mrb[4].mxu0 }
 0x185   : > { %v1330_v40 = vpop.f32.mrb[5].mxu0  ;;  %v598_v43 = vadd.f32 %v1267_v39, %v597_v38 }
 0x186   : > { %975 = vrot.lane.b32.xlu1 %v604_v16, %s1722_s25  ;;  %v600_v41 = vpop.f32.mrb[6].mxu0 }
 0x187   : > { %v1331_v42 = vpop.f32.mrb[7].mxu0  ;;  %v639_v44 = vpack.c.bf16 %v598_v43, %v598_v43 }
 0x189   : > { %v707_v45 = vsel %vm644_vm2, %v639_v44, 0 }
 0x18a   : > { %1339 = vmatpush3.bf16.msra.mxu0 %v707_v45 }
 0x18b   : > { %1350 = vmatprep.subr.bf16.mxu0 %v1718_v0 }
 0x1a0   : > { %605 = vxpose.xlu0.b32.start.end [1/1] (short) (narrow) %v535_v20, 32 }
 0x1f4   : > { %v751_v23 = vpop.permute.xlu0 %750  ;;  %v865_v36 = vpop.permute.xlu1 %864 }
 0x1f8   : > { %v976_v37 = vpop.permute.xlu1 %975 }
 0x220   : > { %v621_v24 = vpop.trf.xlu0 }
 0x224   : > { %v622_v25 = vpop.trf.xlu0 }
 0x225   : > { %v637_v26 = vpack.c.bf16 %v622_v25, %v621_v24 }
 0x227   : > { %v646_v27 = vsel %vm644_vm2, %v637_v26, 0  ;;  %v753_v28 = vrot.slane %v637_v26, 4 }
 0x228   : > { %1333 = vmatpush3.bf16.msra.mxu1 %v646_v27  ;;  %v623_v29 = vpop.trf.xlu0 }
 0x229   : > { %1344 = vmatprep.subr.bf16.mxu1 %v1718_v0  ;;  %v758_v30 = vsel %vm644_vm2, %v753_v28, 0 }
 0x22b   : > { %1335 = vmatmul.mubr.msk.bf16.vlgmr.msra.gmra.mrb[4].mxu1 %vm640_vm3, %v604_v16 }
 0x22c   : > { %1345 = vmatpush3.bf16.msra.mxu1 %v758_v30  ;;  %1346 = vmatprep.mubr.msk.bf16.mxu1 %vm1719_vm0, %v1718_v0  ;;  %v624_v31 = vpop.trf.xlu0 }
 0x22d   : > { %v638_v32 = vpack.c.bf16 %v624_v31, %v623_v29  ;;  %1356 = vmatprep.subr.bf16.mxu1 %v1718_v0 }
 0x22f   : > { %v870_v33 = vsel %vm644_vm2, %v638_v32, 0  ;;  %v978_v34 = vrot.slane %v638_v32, 4 }
 0x231   : > { %v983_v35 = vsel %vm644_vm2, %v978_v34, 0 }
 0x233   : > { %1347 = vmatmul.mubr.msk.bf16.vlgmr.msra.gmra.mrb[8].mxu1 %vm640_vm3, %v751_v23 }
 0x234   : > { %1357 = vmatpush3.bf16.msra.mxu1 %v870_v33  ;;  %1358 = vmatprep.mubr.msk.bf16.mxu1 %vm1719_vm0, %v1718_v0 }
 0x235   : > { %1368 = vmatprep.subr.bf16.mxu1 %v1718_v0 }
 0x23b   : > { %1359 = vmatmul.mubr.msk.bf16.vlgmr.msra.gmra.mrb[12].mxu1 %vm640_vm3, %v865_v36 }
 0x23c   : > { %1369 = vmatpush3.bf16.msra.mxu1 %v983_v35  ;;  %1370 = vmatprep.mubr.msk.bf16.mxu1 %vm1719_vm0, %v1718_v0 }
 0x243   : > { %1371 = vmatmul.mubr.msk.bf16.vlgmr.msra.gmra.mrb[16].mxu1 %vm640_vm3, %v976_v37 }
 0x2fe   : > { %v682_v46 = vpop.f32.mrb[4].mxu1 }
 0x2ff   : > { %v1336_v47 = vpop.f32.mrb[5].mxu1  ;;  %v688_v48 = vsel %vm640_vm3, %v682_v46, -inf }
 0x300   : > { %689 = vmax.xlane.f32.xlu1 %v688_v48  ;;  %v685_v49 = vpop.f32.mrb[6].mxu1 }
 0x301   : > { %v1337_v50 = vpop.f32.mrb[7].mxu1 }
 0x306   : > { %v794_v51 = vpop.f32.mrb[8].mxu1 }
 0x307   : > { %v1348_v52 = vpop.f32.mrb[9].mxu1  ;;  %v800_v53 = vsel %vm640_vm3, %v794_v51, -inf }
 0x308   : > { %801 = vmax.xlane.f32.xlu0 %v800_v53  ;;  %v797_v54 = vpop.f32.mrb[10].mxu1 }
 0x309   : > { %v1349_v55 = vpop.f32.mrb[11].mxu1 }
 0x30e   : > { %v906_v56 = vpop.f32.mrb[12].mxu1 }
 0x30f   : > { %v1360_v57 = vpop.f32.mrb[13].mxu1  ;;  %v912_v58 = vsel %vm640_vm3, %v906_v56, -inf }
 0x310   : > { %913 = vmax.xlane.f32.xlu1 %v912_v58  ;;  %v909_v59 = vpop.f32.mrb[14].mxu1 }
 0x311   : > { %v1361_v60 = vpop.f32.mrb[15].mxu1 }
 0x316   : > { %v1019_v61 = vpop.f32.mrb[16].mxu1 }
 0x317   : > { %v1372_v62 = vpop.f32.mrb[17].mxu1  ;;  %v1025_v63 = vsel %vm640_vm3, %v1019_v61, -inf }
 0x318   : > { %1026 = vmax.xlane.f32.xlu1 %v1025_v63  ;;  %v1022_v1 = vpop.f32.mrb[18].mxu1 }
 0x319   : > { %v1373_v2 = vpop.f32.mrb[19].mxu1 }
 0x329   : > { %816 = vrot.lane.b32.xlu1 %v639_v44, %s1721_s23 }
 0x38d   : > { %v690_v3 = vpop.xlane.xlu1 %689 }
 0x38e   : > { %v691_v4 = vsub.f32 %v682_v46, %v690_v3 }
 0x390   : > { %v692_v5 = vmul.f32 1.442695, %v691_v4 }
 0x392   : > { %1484 = vpow2.f32 %v692_v5 }
 0x395   : > { %v802_v6 = vpop.xlane.xlu0 %801 }
 0x396   : > { %v803_v7 = vsub.f32 %v794_v51, %v802_v6 }
 0x398   : > { %v804_v8 = vmul.f32 1.442695, %v803_v7 }
 0x39a   : > { %1486 = vpow2.f32 %v804_v8 }
 0x39c   : > { %v1485_v9 = vpop.eup %1484 }
 0x39d   : > { %v694_v10 = vsel %vm640_vm3, %v1485_v9, 0.0  ;;  %v914_v13 = vpop.xlane.xlu1 %913 }
 0x39e   : > { %695 = vadd.xlane.f32.xlu1 %v694_v10  ;;  %v915_v14 = vsub.f32 %v906_v56, %v914_v13 }
 0x3a0   : > { %v916_v16 = vmul.f32 1.442695, %v915_v14 }
 0x3a2   : > { %1488 = vpow2.f32 %v916_v16 }
 0x3a4   : > { %v1487_v11 = vpop.eup %1486 }
 0x3a5   : > { %v806_v12 = vsel %vm640_vm3, %v1487_v11, 0.0  ;;  %v1027_v15 = vpop.xlane.xlu1 %1026 }
 0x3a6   : > { %807 = vadd.xlane.f32.xlu1 %v806_v12  ;;  %v1028_v17 = vsub.f32 %v1019_v61, %v1027_v15 }
 0x3a8   : > { %v1029_v18 = vmul.f32 1.442695, %v1028_v17 }
 0x3a9   : > { %v817_v23 = vpop.permute.xlu1 %816 }
 0x3aa   : > { %1490 = vpow2.f32 %v1029_v18  ;;  %v822_v34 = vsel %vm644_vm2, %v817_v23, 0 }
 0x3ac   : > { %v1489_v19 = vpop.eup %1488 }
 0x3ad   : > { %v918_v20 = vsel %vm640_vm3, %v1489_v19, 0.0 }
 0x3b4   : > { %v1491_v21 = vpop.eup %1490 }
 0x3b5   : > { %v1031_v22 = vsel %vm640_vm3, %v1491_v21, 0.0 }
 0x3b7   : > { %927 = vrot.lane.b32.xlu1 %v639_v44, %s1720_s21 }
 0x3db   : > { %919 = vadd.xlane.f32.xlu1 %v918_v20 }
 0x3df   : > { %1032 = vadd.xlane.f32.xlu1 %v1031_v22 }
 0x3f0   : > { %1040 = vrot.lane.b32.xlu1 %v639_v44, %s1722_s25  ;;  %s2093_s25 = scalar_lea.hbm %s2151_s8, %s1280_s15 }
 0x42b   : > { %v696_v24 = vpop.xlane.xlu1 %695 }
 0x42c   : > { %1492 = vrcp.f32 %v696_v24 }
 0x433   : > { %v808_v25 = vpop.xlane.xlu1 %807 }
 0x434   : > { %1494 = vrcp.f32 %v808_v25 }
 0x436   : > { %v1493_v26 = vpop.eup %1492 }
 0x437   : > { %v698_v27 = vmul.f32 %v1493_v26, %v696_v24  ;;  %v928_v38 = vpop.permute.xlu1 %927 }
 0x438   : > { %v933_v40 = vsel %vm644_vm2, %v928_v38, 0 }
 0x439   : > { %v699_v28 = vsub.f32 2.0, %v698_v27 }
 0x43b   : > { %v700_v29 = vmul.f32 %v1493_v26, %v699_v28 }
 0x43d   : > { %v701_v30 = vmul.f32 %v1485_v9, %v700_v29 }
 0x43e   : > { %v1495_v31 = vpop.eup %1494 }
 0x43f   : > { %v702_v32 = vpack.c.bf16 %v701_v30, %v701_v30  ;;  %v810_v33 = vmul.f32 %v1495_v31, %v808_v25 }
 0x441   : > { %v811_v35 = vsub.f32 2.0, %v810_v33  ;;  %1341 = vmatmul.mubr.msk.bf16.vlgmr.msra.gmra.mrb[8].mxu0 %vm640_vm3, %v702_v32 }
 0x442   : > { %1351 = vmatpush3.bf16.msra.mxu0 %v822_v34  ;;  %1352 = vmatprep.mubr.msk.bf16.mxu0 %vm1719_vm0, %v1718_v0 }
 0x443   : > { %v812_v36 = vmul.f32 %v1495_v31, %v811_v35  ;;  %1362 = vmatprep.subr.bf16.mxu0 %v1718_v0 }
 0x445   : > { %v813_v37 = vmul.f32 %v1487_v11, %v812_v36 }
 0x447   : > { %v814_v39 = vpack.c.bf16 %v813_v37, %v813_v37 }
 0x449   : > { %1353 = vmatmul.mubr.msk.bf16.vlgmr.msra.gmra.mrb[12].mxu0 %vm640_vm3, %v814_v39 }
 0x44a   : > { %1363 = vmatpush3.bf16.msra.mxu0 %v933_v40  ;;  %1364 = vmatprep.mubr.msk.bf16.mxu0 %vm1719_vm0, %v1718_v0 }
 0x44b   : > { %1374 = vmatprep.subr.bf16.mxu0 %v1718_v0 }
 0x468   : > { %v920_v41 = vpop.xlane.xlu1 %919 }
 0x469   : > { %1496 = vrcp.f32 %v920_v41 }
 0x46c   : > { %v1033_v42 = vpop.xlane.xlu1 %1032 }
 0x46d   : > { %1498 = vrcp.f32 %v1033_v42 }
 0x470   : > { %v1041_v51 = vpop.permute.xlu1 %1040 }
 0x471   : > { %v1046_v54 = vsel %vm644_vm2, %v1041_v51, 0 }
 0x473   : > { %v1497_v43 = vpop.eup %1496 }
 0x474   : > { %v922_v44 = vmul.f32 %v1497_v43, %v920_v41 }
 0x476   : > { %v923_v45 = vsub.f32 2.0, %v922_v44 }
 0x477   : > { %v1499_v46 = vpop.eup %1498 }
 0x478   : > { %v924_v47 = vmul.f32 %v1497_v43, %v923_v45  ;;  %v1035_v48 = vmul.f32 %v1499_v46, %v1033_v42 }
 0x47a   : > { %v925_v49 = vmul.f32 %v1489_v19, %v924_v47  ;;  %v1036_v50 = vsub.f32 2.0, %v1035_v48 }
 0x47c   : > { %v926_v52 = vpack.c.bf16 %v925_v49, %v925_v49  ;;  %v1037_v53 = vmul.f32 %v1499_v46, %v1036_v50 }
 0x47e   : > { %1365 = vmatmul.mubr.msk.bf16.vlgmr.msra.gmra.mrb[16].mxu0 %vm640_vm3, %v926_v52  ;;  %v1038_v55 = vmul.f32 %v1491_v21, %v1037_v53 }
 0x47f   : > { %1375 = vmatpush3.bf16.msra.mxu0 %v1046_v54  ;;  %1376 = vmatprep.mubr.msk.bf16.mxu0 %vm1719_vm0, %v1718_v0 }
 0x480   : > { %v1039_v56 = vpack.c.bf16 %v1038_v55, %v1038_v55 }
 0x486   : > { %1377 = vmatmul.mubr.msk.bf16.vlgmr.msra.gmra.mrb[20].mxu0 %vm640_vm3, %v1039_v56 }
 0x514   : > { %v743_v57 = vpop.f32.mrb[8].mxu0 }
 0x515   : > { %v1342_v58 = vpop.f32.mrb[9].mxu0 }
 0x516   : > { %v746_v59 = vpop.f32.mrb[10].mxu0 }
 0x517   : > { %v1343_v60 = vpop.f32.mrb[11].mxu0 }
 0x51c   : > { %v858_v61 = vpop.f32.mrb[12].mxu0 }
 0x51d   : > { %1089 = vrot.lane.b32.xlu0 %v858_v61, %s1723_s24  ;;  %v1354_v62 = vpop.f32.mrb[13].mxu0 }
 0x51e   : > { %v861_v63 = vpop.f32.mrb[14].mxu0 }
 0x51f   : > { %v1355_v1 = vpop.f32.mrb[15].mxu0 }
 0x551   : > { %v969_v2 = vpop.f32.mrb[16].mxu0 }
 0x552   : > { %1093 = vrot.lane.b32.xlu1 %v969_v2, %s1724_s17  ;;  %v1366_v0 = vpop.f32.mrb[17].mxu0 }
 0x553   : > { %v972_v3 = vpop.f32.mrb[18].mxu0 }
 0x554   : > { %v1367_v4 = vpop.f32.mrb[19].mxu0 }
 0x559   : > { %v1082_v5 = vpop.f32.mrb[20].mxu0 }
 0x55a   : > { %1097 = vrot.lane.b32.xlu1 %v1082_v5, %s1725_s14  ;;  %v1378_v6 = vpop.f32.mrb[21].mxu0 }
 0x55b   : > { %v1085_v7 = vpop.f32.mrb[22].mxu0 }
 0x55c   : > { %v1379_v8 = vpop.f32.mrb[23].mxu0 }
 0x58f   : > { %v1090_v9 = vpop.permute.xlu0 %1089 }
 0x590   : > { %v1100_v11 = vsel %vm640_vm3, %v743_v57, %v1090_v9 }
 0x5c4   : > { %v1094_v10 = vpop.permute.xlu1 %1093 }
 0x5c5   : > { %v1102_v12 = vsel %vm1101_vm4, %v1100_v11, %v1094_v10 }
 0x5cc   : > { %v1098_v13 = vpop.permute.xlu1 %1097 }
 0x5cd   : > { %v1104_v14 = vsel %vm1103_vm5, %v1102_v12, %v1098_v13 }
 0x5ce   : > { %1105 = vst.msk [vmem:[%s403_s11] sm:$0xff] %vm430_vm1, %v1104_v14 }
 0x5cf   : > { %1629 = shalt.err (!%p1626_p7)
}
 0x5d0   : > { %s1630_s2 = scalar_lea.hbm %s2093_s25, 128  ;;  %s1634_s12 = scalar_lea.hbm %s2151_s8, 256 }
 0x5d1   : > { %p1631_p13 = scmp.ne.s32.totalorder %s2093_s25, %s1630_s2  ;;  %p1635_p11 = scmp.lt.u32.totalorder %s2093_s25, %s2151_s8 }
 0x5d2   : > { %p1636_p12 = scmp.lt.u32.totalorder %s1634_s12, %s1630_s2  ;;  %p1638_p1 = scmp.lt.u32.totalorder %s1630_s2, %s2093_s25 }
 0x5d3   : > { %p1632_p2 = pnand %p1631_p13, %p2182_p6 }
 0x5d4   : > { %p1637_p0 = por %p1636_p12, %p1635_p11 }
 0x5d5   : > { %p1633_p8 = pneg %p1632_p2 }
 0x5d6   : > { %p1639_p10 = por %p1638_p1, %p1637_p0 }
 0x5d8   : > { %p1640_p3 = pnand %p1639_p10, %p1633_p8 }
 0x5da   : > { %1643 = shalt.err (!%p1640_p3)
}
 0x5db   : > { %1392 = dma.vmem_to_hbm [thread:$0]  (%p2182_p6), %s2095_s13, 128, %s2093_s25, %s1107_s30  }
 0x5dc PF: > { %s2183_s17 = sld [smem:[#allocation16_spill]]  ;;  %s2184_s14 = sld [smem:[#allocation18_spill]] }
 0x5dd   : > { %p2186_p9 = scmp.ge.s32.totalorder %s1710_s10, 2 }
 0x5e2   : > { %s1133_s26 = sand.u32 1, %s2183_s17   ;;  %p2185_p4 = scmp.ne.s32.totalorder %s2184_s14, 0 }
 0x5e3   : > { %s1134_s15 = scalar_lea.sflag [#allocation4], %s1133_s26 }
 0x5e4   : > { %p1409_p5 = pnand %p2186_p9, %p2185_p4 }
 0x5e6   : > { %1685 = dma.done.wait (!%p1409_p5), %s1134_s15, 128  }
 0x5e7   : > { %1687 = vsyncadd (!%p1409_p5), %s1134_s15, 4294967168  ;;  %s28_s10 = sadd.s32 1, %s1710_s10   ;;  %s2187_s18 = sld [smem:[#allocation20_spill]] }
 0x5e8   : > { %p25_p7 = scmp.ge.s32.totalorder %s28_s10, 4   ;;  %s2188_s30 = sld [smem:[#allocation17_spill]] }
 0x5e9   : > { %s2189_s9 = sld [smem:[#allocation19_spill]]  ;;  %s2190_s27 = smov %s1694_s28 }
 0x5ea   : > { %s2191_s28 = smov %s1698_s29  ;;  %27 = sbr.rel (!%p25_p7) target bundleno = 12 (0xc), region = 118 }
 0x5ed   : > { %s2192_s29 = smov %s2187_s18 }
 0x5f1   :  { %1139 = vsyncpa [#allocation3], 1 }
 0x5f2   :  { %1141 = vsyncpa [#allocation3 + $0x1], 1 }
 0x5f3   :  { %1142 = vsyncpa [#allocation6], 1 }
 0x5f4   :  { %1144 = vsyncpa [#allocation6 + $0x1], 1 }
 0x5f5   :  { %1145 = vsyncpa [#allocation9], 1 }
 0x5f6   :  { %1146 = vsyncpa [#allocation4], 1 }
 0x5f7   :  { %1148 = vsyncpa [#allocation4 + $0x1], 1 }

</bundles_post_ra>
